<compile_context>
chip_gen: v5e
topology: v5e:2x2
jax: 0.10.0
libtpu: 0.0.40
codegen_flags: <defaults>
</compile_context>

<pallas_src>
import jax
import jax.numpy as jnp
from jax.experimental import pallas as pl
from jax.experimental.pallas import tpu as pltpu


def _round_up(n, m):
    return ((n + m - 1) // m) * m


def _vmem_capacity_bytes():
    # Trace-time hardware query; fall back to the v7x (smallest) size so the
    # budget is always safe if the query is unavailable.
    try:
        info = pltpu.get_tpu_info()
        return int(getattr(info, "vmem_capacity_bytes", 64 << 20))
    except Exception:
        return 64 << 20


def mlp_kernel(x_ref, w1_ref, b1_ref, w2_ref, b2_ref, o_ref):
    # layer_1: (TB, F) @ (F, Hp). x arrives as f32 straight from HBM; cast to
    # bf16 at the MXU feed, accumulate in f32, bias + ReLU in f32.
    x = x_ref[...].astype(jnp.bfloat16)
    h = jnp.dot(x, w1_ref[...], preferred_element_type=jnp.float32)
    h = jnp.maximum(h + b1_ref[...], 0.0)
    # layer_2: downcast hidden to bf16 for the MXU, accumulate in f32.
    out = jnp.dot(h.astype(jnp.bfloat16), w2_ref[...],
                  preferred_element_type=jnp.float32)
    o_ref[...] = (out + b2_ref[...]).astype(o_ref.dtype)


def mlp_forward(x_nchw, w1, b1, w2, b2, *, batch_tile=512):
    """x_nchw: [B, ...] float32. Weights stored [in, out]. Returns [B, num_classes] f32."""
    B = x_nchw.shape[0]
    x_flat = x_nchw.reshape(B, -1)                       # nn.Flatten()
    F = x_flat.shape[1]
    H = w1.shape[1]
    C = w2.shape[1]

    # Only the (small) weights/biases get 128-lane padding; x is passed through
    # untouched and the batch is never padded.  Zero padding is mathematically
    # inert (ReLU(0 + 0) = 0, zero rows/cols contribute nothing).
    Hp = _round_up(H, 128)
    Cp = _round_up(C, 128)

    w1b = jnp.zeros((F, Hp), jnp.bfloat16).at[:, :H].set(w1.astype(jnp.bfloat16))
    b1p = jnp.zeros((1, Hp), jnp.float32).at[:, :H].set(
        b1.astype(jnp.float32).reshape(1, H))
    w2b = jnp.zeros((Hp, Cp), jnp.bfloat16).at[:H, :C].set(w2.astype(jnp.bfloat16))
    b2p = jnp.zeros((1, Cp), jnp.float32).at[:, :C].set(
        b2.astype(jnp.float32).reshape(1, C))

    # --- Batch tile selection -----------------------------------------------
    # >= 2 grid steps so the "parallel" batch axis shards across v7x's 2 TCs;
    # a large default tile amortizes per-grid-step overhead on v5e/v6e.
    if B <= 8:
        TB = B                                   # single block == full dim
    else:
        TB = max(8, min(batch_tile, _round_up(pl.cdiv(B, 2), 8)))

    # Conservative VMEM footprint: assume 2 buffers for EVERY input spec
    # (constant index_map does not guarantee single buffering).
    def resident_bytes(tb):
        return (2 * tb * F * 4                      # x tiles (f32, double-buffered)
                + 2 * (F * Hp * 2 + Hp * 4)         # w1 (bf16) + b1 (f32)
                + 2 * (Hp * Cp * 2 + Cp * 4)        # w2 (bf16) + b2 (f32)
                + 2 * tb * Cp * 4                   # out tiles (f32)
                + tb * Hp * 4)                      # hidden activations (f32)

    vmem_budget = int(_vmem_capacity_bytes() * 0.8)   # ~51 MiB v7x, ~102 MiB v5e/v6e
    while TB > 8 and resident_bytes(TB) + (4 << 20) > vmem_budget:
        TB = max(8, _round_up(TB // 2, 8))
    vmem_limit = int(min(max(resident_bytes(TB) + (4 << 20), 32 << 20), vmem_budget))

    grid_b = pl.cdiv(B, TB)                      # ragged last block is masked

    flops = 2 * B * F * Hp + 2 * B * Hp * Cp
    bytes_accessed = (B * F * 4 + F * Hp * 2 + Hp * 4
                      + Hp * Cp * 2 + Cp * 4 + B * Cp * 4)

    out_padded = pl.pallas_call(
        mlp_kernel,
        out_shape=jax.ShapeDtypeStruct((B, Cp), jnp.float32),
        grid=(grid_b,),
        in_specs=[
            pl.BlockSpec((TB, F), lambda i: (i, 0)),    # x: streamed over batch
            pl.BlockSpec((F, Hp), lambda i: (0, 0)),    # w1: VMEM-resident
            pl.BlockSpec((1, Hp), lambda i: (0, 0)),    # b1: VMEM-resident
            pl.BlockSpec((Hp, Cp), lambda i: (0, 0)),   # w2: VMEM-resident
            pl.BlockSpec((1, Cp), lambda i: (0, 0)),    # b2: VMEM-resident
        ],
        out_specs=pl.BlockSpec((TB, Cp), lambda i: (i, 0)),
        compiler_params=pltpu.CompilerParams(
            dimension_semantics=("parallel",),
            vmem_limit_bytes=vmem_limit),
        cost_estimate=pl.CostEstimate(
            flops=flops, transcendentals=0, bytes_accessed=bytes_accessed),
    )(x_flat, w1b, b1p, w2b, b2p)

    return out_padded[:, :C]


def init_params(key, in_feature, hidden_size, num_classes):
    """Deterministic init matching nn.Linear's U(-1/sqrt(fan_in), 1/sqrt(fan_in)).
    Weights are stored transposed vs PyTorch ([in, out]) so the kernel does x @ W + b."""
    k1, k2, k3, k4 = jax.random.split(key, 4)
    lim1 = 1.0 / jnp.sqrt(in_feature)
    lim2 = 1.0 / jnp.sqrt(hidden_size)
    w1 = jax.random.uniform(k1, (in_feature, hidden_size), jnp.float32, -lim1, lim1)
    b1 = jax.random.uniform(k2, (1, hidden_size), jnp.float32, -lim1, lim1)
    w2 = jax.random.uniform(k3, (hidden_size, num_classes), jnp.float32, -lim2, lim2)
    b2 = jax.random.uniform(k4, (1, num_classes), jnp.float32, -lim2, lim2)
    return w1, b1, w2, b2


if __name__ == "__main__":
    key = jax.random.PRNGKey(0)
    kx, kp = jax.random.split(key)

    # Small shapes consistent with the module: flatten a [2, 4, 16, 16] image
    # batch -> in_feature = 4*16*16 = 1024, hidden_size = 32, num_classes = 10.
    B, Cin, Himg, Wimg = 2, 4, 16, 16
    in_feature = Cin * Himg * Wimg
    hidden_size = 32
    num_classes = 10

    x = jax.random.normal(kx, (B, Cin, Himg, Wimg), jnp.float32)
    w1, b1, w2, b2 = init_params(kp, in_feature, hidden_size, num_classes)

    mlp = jax.jit(mlp_forward)
    out = jax.block_until_ready(mlp(x, w1, b1, w2, b2))
    assert out.shape == (B, num_classes)

    # Reference 1: plain JAX mirroring the kernel's bf16 feeds (tight check).
    xf = x.reshape(B, -1).astype(jnp.bfloat16).astype(jnp.float32)
    w1f = w1.astype(jnp.bfloat16).astype(jnp.float32)
    w2f = w2.astype(jnp.bfloat16).astype(jnp.float32)
    h_ref = jnp.maximum(xf @ w1f + b1, 0.0)
    ref_bf16 = h_ref.astype(jnp.bfloat16).astype(jnp.float32) @ w2f + b2
    assert jnp.allclose(out, ref_bf16, atol=2e-3, rtol=2e-3)

    # Reference 2: full-f32 module semantics (loose check for bf16 feeds).
    x_flat = x.reshape(B, -1)
    ref_f32 = jnp.maximum(x_flat @ w1 + b1, 0.0) @ w2 + b2
    assert jnp.allclose(out, ref_f32, atol=5e-2, rtol=5e-2)

    print("KERNEL_OK")
</pallas_src>

<mosaic_0001>
module attributes {stable_mosaic.version = 11 : i64} {
  func.func @mlp_kernel(%arg0: i32, %arg1: memref<2x1024xf32, #tpu.memory_space<vmem>>, %arg2: memref<1024x128xbf16, #tpu.memory_space<vmem>>, %arg3: memref<1x128xf32, #tpu.memory_space<vmem>>, %arg4: memref<128x128xbf16, #tpu.memory_space<vmem>>, %arg5: memref<1x128xf32, #tpu.memory_space<vmem>>, %arg6: memref<2x128xf32, #tpu.memory_space<vmem>>) attributes {dimension_semantics = [#tpu.dimension_semantics<parallel>], iteration_bounds = array<i64: 1>, scalar_prefetch = 0 : i64, scratch_operands = 0 : i64, tpu.core_type = #tpu.core_type<tc>, window_params = [{transform_indices = @transform_0, window_bounds = array<i64: 2, 1024>}, {pipeline_mode = #tpu.pipeline_mode<synchronous>, transform_indices = @transform_1, window_bounds = array<i64: 1024, 128>}, {pipeline_mode = #tpu.pipeline_mode<synchronous>, transform_indices = @transform_2, window_bounds = array<i64: 1, 128>}, {pipeline_mode = #tpu.pipeline_mode<synchronous>, transform_indices = @transform_3, window_bounds = array<i64: 128, 128>}, {pipeline_mode = #tpu.pipeline_mode<synchronous>, transform_indices = @transform_4, window_bounds = array<i64: 1, 128>}, {transform_indices = @transform_5, window_bounds = array<i64: 2, 128>}]} {
    %c0 = arith.constant 0 : index
    %c0_0 = arith.constant 0 : index
    %0 = vector.load %arg1[%c0, %c0_0] : memref<2x1024xf32, #tpu.memory_space<vmem>>, vector<2x1024xf32>
    %1 = arith.truncf %0 : vector<2x1024xf32> to vector<2x1024xbf16>
    %c0_1 = arith.constant 0 : index
    %c0_2 = arith.constant 0 : index
    %2 = vector.load %arg2[%c0_1, %c0_2] : memref<1024x128xbf16, #tpu.memory_space<vmem>>, vector<1024x128xbf16>
    %cst = arith.constant dense<0.000000e+00> : vector<2x128xf32>
    %3 = tpu.matmul %1, %2, %cst {dimension_numbers = #tpu.dot_dimension_numbers<[1], [0], [0], [1], [0, 0, 1, 1], [], []>} : vector<2x1024xbf16>, vector<1024x128xbf16>, vector<2x128xf32> -> vector<2x128xf32>
    %c0_3 = arith.constant 0 : index
    %c0_4 = arith.constant 0 : index
    %4 = vector.load %arg3[%c0_3, %c0_4] : memref<1x128xf32, #tpu.memory_space<vmem>>, vector<1x128xf32>
    %5 = vector.broadcast %4 : vector<1x128xf32> to vector<2x128xf32>
    %6 = arith.addf %3, %5 : vector<2x128xf32>
    %cst_5 = arith.constant 0.000000e+00 : f32
    %7 = vector.broadcast %cst_5 : f32 to vector<2x128xf32>
    %8 = arith.maximumf %6, %7 : vector<2x128xf32>
    %9 = arith.truncf %8 : vector<2x128xf32> to vector<2x128xbf16>
    %c0_6 = arith.constant 0 : index
    %c0_7 = arith.constant 0 : index
    %10 = vector.load %arg4[%c0_6, %c0_7] : memref<128x128xbf16, #tpu.memory_space<vmem>>, vector<128x128xbf16>
    %cst_8 = arith.constant dense<0.000000e+00> : vector<2x128xf32>
    %11 = tpu.matmul %9, %10, %cst_8 {dimension_numbers = #tpu.dot_dimension_numbers<[1], [0], [0], [1], [0, 0, 1, 1], [], []>} : vector<2x128xbf16>, vector<128x128xbf16>, vector<2x128xf32> -> vector<2x128xf32>
    %c0_9 = arith.constant 0 : index
    %c0_10 = arith.constant 0 : index
    %12 = vector.load %arg5[%c0_9, %c0_10] : memref<1x128xf32, #tpu.memory_space<vmem>>, vector<1x128xf32>
    %13 = vector.broadcast %12 : vector<1x128xf32> to vector<2x128xf32>
    %14 = arith.addf %11, %13 : vector<2x128xf32>
    %c0_11 = arith.constant 0 : index
    %c0_12 = arith.constant 0 : index
    %15 = vector.load %arg6[%c0_11, %c0_12] : memref<2x128xf32, #tpu.memory_space<vmem>>, vector<2x128xf32>
    tpu.vector_store %arg6[%c0_11, %c0_12], %14 {strides = array<i32>} : memref<2x128xf32, #tpu.memory_space<vmem>>, vector<2x128xf32>,
    return
  }
  func.func @transform_0(%arg0: i32) -> (i32, i32) {
    %c0_i32 = arith.constant 0 : i32
    %c0_i32_0 = arith.constant 0 : i32
    return %arg0, %c0_i32 : i32, i32
  }
  func.func @transform_1(%arg0: i32) -> (i32, i32) {
    %c0_i32 = arith.constant 0 : i32
    %c0_i32_0 = arith.constant 0 : i32
    %c0_i32_1 = arith.constant 0 : i32
    return %c0_i32, %c0_i32_0 : i32, i32
  }
  func.func @transform_2(%arg0: i32) -> (i32, i32) {
    %c0_i32 = arith.constant 0 : i32
    %c0_i32_0 = arith.constant 0 : i32
    %c0_i32_1 = arith.constant 0 : i32
    return %c0_i32, %c0_i32_0 : i32, i32
  }
  func.func @transform_3(%arg0: i32) -> (i32, i32) {
    %c0_i32 = arith.constant 0 : i32
    %c0_i32_0 = arith.constant 0 : i32
    %c0_i32_1 = arith.constant 0 : i32
    return %c0_i32, %c0_i32_0 : i32, i32
  }
  func.func @transform_4(%arg0: i32) -> (i32, i32) {
    %c0_i32 = arith.constant 0 : i32
    %c0_i32_0 = arith.constant 0 : i32
    %c0_i32_1 = arith.constant 0 : i32
    return %c0_i32, %c0_i32_0 : i32, i32
  }
  func.func @transform_5(%arg0: i32) -> (i32, i32) {
    %c0_i32 = arith.constant 0 : i32
    %c0_i32_0 = arith.constant 0 : i32
    return %arg0, %c0_i32 : i32, i32
  }
}

</mosaic_0001>

<bundles_post_ra>
// kernel: mlp_forward.1
= control target key start
LH: loop header
LB: loop body
LE: loop exit
PB: predicated region body
PF: predicated region fallthrough
CT: control target
= control target key end

     0   :  { %s1423_s0 = inlined_call_operand.vmem [shape: f32[2,1024], index: 0, kind: input, shape index: {}]   ;;  %s1424_s1 = inlined_call_operand.vmem [shape: bf16[1024,128], index: 1, kind: input, shape index: {}]   ;;  %s1425_s2 = inlined_call_operand.vmem [shape: f32[1,128], index: 2, kind: input, shape index: {}]   ;;  %s1426_s3 = inlined_call_operand.vmem [shape: bf16[128,128], index: 3, kind: input, shape index: {}]   ;;  %s1427_s4 = inlined_call_operand.vmem [shape: f32[1,128], index: 4, kind: input, shape index: {}]   ;;  %s1428_s5 = inlined_call_operand.hbm [shape: f32[2,128], index: 5, kind: output, shape index: {}]  }
   0x1   :  { %v1067_v0 = vld [vmem:[%s1424_s1 + $0x38] sm:$0xff]  ;;  %v1066_v4 = vld [vmem:[%s1424_s1 + $0x30] sm:$0xff]  ;;  %v1065_v8 = vld [vmem:[%s1424_s1 + $0x28] sm:$0xff] }
   0x2   :  { %v1075_v1 = vld [vmem:[%s1424_s1 + $0x78] sm:$0xff]  ;;  %568 = vmatpush.bf16.msra.mxu0 %v1067_v0  ;;  %v1074_v5 = vld [vmem:[%s1424_s1 + $0x70] sm:$0xff]  ;;  %v1073_v9 = vld [vmem:[%s1424_s1 + $0x68] sm:$0xff] }
   0x3   :  { %v1083_v2 = vld [vmem:[%s1424_s1 + $0xb8] sm:$0xff]  ;;  %581 = vmatpush.bf16.msra.mxu1 %v1075_v1  ;;  %v1082_v6 = vld [vmem:[%s1424_s1 + $0xb0] sm:$0xff]  ;;  %v1081_v10 = vld [vmem:[%s1424_s1 + $0xa8] sm:$0xff] }
   0x4   :  { %v1091_v3 = vld [vmem:[%s1424_s1 + $0xf8] sm:$0xff]  ;;  %594 = vmatpush.bf16.msra.mxu2 %v1083_v2  ;;  %v1090_v7 = vld [vmem:[%s1424_s1 + $0xf0] sm:$0xff]  ;;  %v1089_v11 = vld [vmem:[%s1424_s1 + $0xe8] sm:$0xff] }
   0x5   :  { %607 = vmatpush.bf16.msra.mxu3 %v1091_v3  ;;  %v1064_v12 = vld [vmem:[%s1424_s1 + $0x20] sm:$0xff]  ;;  %v1063_v17 = vld [vmem:[%s1424_s1 + $0x18] sm:$0xff]  ;;  %v1062_v21 = vld [vmem:[%s1424_s1 + $0x10] sm:$0xff] }
   0x6   :  { %569 = vmatpush.bf16.msra.mxu0 %v1066_v4  ;;  %v1072_v13 = vld [vmem:[%s1424_s1 + $0x60] sm:$0xff]  ;;  %v1071_v18 = vld [vmem:[%s1424_s1 + $0x58] sm:$0xff]  ;;  %v1070_v22 = vld [vmem:[%s1424_s1 + $0x50] sm:$0xff] }
   0x7   :  { %582 = vmatpush.bf16.msra.mxu1 %v1074_v5  ;;  %v1080_v14 = vld [vmem:[%s1424_s1 + $0xa0] sm:$0xff]  ;;  %v1079_v19 = vld [vmem:[%s1424_s1 + $0x98] sm:$0xff] }
   0x8   :  { %595 = vmatpush.bf16.msra.mxu2 %v1082_v6  ;;  %v1088_v15 = vld [vmem:[%s1424_s1 + $0xe0] sm:$0xff]  ;;  %v1087_v20 = vld [vmem:[%s1424_s1 + $0xd8] sm:$0xff] }
   0x9   :  { %608 = vmatpush.bf16.msra.mxu3 %v1090_v7  ;;  %v21_v16 = vld [vmem:[%s1423_s0] sm:$0xff] }
   0xa   :  { %570 = vmatpush.bf16.msra.mxu0 %v1065_v8  ;;  %25 = vst [vmem:[#allocation1] ss:$4 sm:$0xff] %v21_v16 }
   0xb   :  { %583 = vmatpush.bf16.msra.mxu1 %v1073_v9 }
   0xc   :  { %596 = vmatpush.bf16.msra.mxu2 %v1081_v10 }
   0xd   :  { %609 = vmatpush.bf16.msra.mxu3 %v1089_v11 }
   0xe   :  { %571 = vmatpush.bf16.msra.mxu0 %v1064_v12 }
   0xf   :  { %584 = vmatpush.bf16.msra.mxu1 %v1072_v13 }
  0x10   :  { %597 = vmatpush.bf16.msra.mxu2 %v1080_v14 }
  0x11   :  { %610 = vmatpush.bf16.msra.mxu3 %v1088_v15 }
  0x12   :  { %572 = vmatpush.bf16.msra.mxu0 %v1063_v17 }
  0x13   :  { %585 = vmatpush.bf16.msra.mxu1 %v1071_v18 }
  0x14   :  { %10 = vsyncpa [#allocation3], 0  ;;  %598 = vmatpush.bf16.msra.mxu2 %v1079_v19  ;;  %v1078_v23 = vld [vmem:[%s1424_s1 + $0x90] sm:$0xff]  ;;  %v1061_v25 = vld [vmem:[%s1424_s1 + $0x8] sm:$0xff]  ;;  %s1161_s13 = smov [#allocation2]   ;;  %s763_s17 = sshll.u32 %s1428_s5, 4  ;;  %s764_s17 = int_to_ptr.hbm [resolvable:$true] %s763_s17 }
  0x15   :  { %611 = vmatpush.bf16.msra.mxu3 %v1087_v20  ;;  %v1086_v24 = vld [vmem:[%s1424_s1 + $0xd0] sm:$0xff]  ;;  %v1069_v26 = vld [vmem:[%s1424_s1 + $0x48] sm:$0xff]  ;;  %v1060_v30 = vld [vmem:[%s1424_s1] sm:$0xff]  ;;  %s761_s14 = sshll.u32 %s1161_s13, 4  ;;  %s762_s14 = int_to_ptr.vmem [resolvable:$true] %s761_s14 }
  0x16   :  { %573 = vmatpush.bf16.msra.mxu0 %v1062_v21  ;;  %v1077_v27 = vld [vmem:[%s1424_s1 + $0x88] sm:$0xff]  ;;  %v1068_v31 = vld [vmem:[%s1424_s1 + $0x40] sm:$0xff]  ;;  %v1099_v34 = vld [vmem:[%s1424_s1 + $0x138] sm:$0xff] }
  0x17   :  { %586 = vmatpush.bf16.msra.mxu1 %v1070_v22  ;;  %v1085_v28 = vld [vmem:[%s1424_s1 + $0xc8] sm:$0xff]  ;;  %v1076_v32 = vld [vmem:[%s1424_s1 + $0x80] sm:$0xff]  ;;  %v1107_v35 = vld [vmem:[%s1424_s1 + $0x178] sm:$0xff] }
  0x18   :  { %599 = vmatpush.bf16.msra.mxu2 %v1078_v23  ;;  %v22_v29 = vld [vmem:[%s1423_s0 + $0x8] sm:$0xff]  ;;  %v1084_v33 = vld [vmem:[%s1424_s1 + $0xc0] sm:$0xff]  ;;  %v30_v36 = vld.sshfl [vmem:[#allocation1 + $0x10] sm:$0xff pattern:$0x73625140] }
  0x19   :  { %612 = vmatpush.bf16.msra.mxu3 %v1086_v24  ;;  %27 = vst [vmem:[#allocation1 + $0x20] ss:$4 sm:$0xff] %v22_v29  ;;  %v28_v37 = vld.sshfl [vmem:[#allocation1] sm:$0xff pattern:$0x73625140]  ;;  %v1115_v40 = vld [vmem:[%s1424_s1 + $0x1b8] sm:$0xff]  ;;  %v46_v42 = vpack.c.bf16 %v30_v36, %v30_v36 }
  0x1a   :  { %574 = vmatpush.bf16.msra.mxu0 %v1061_v25  ;;  %v31_v38 = vld.sshfl [vmem:[#allocation1 + $0x18] sm:$0xff pattern:$0x73625140]  ;;  %v29_v39 = vld.sshfl [vmem:[#allocation1 + $0x8] sm:$0xff pattern:$0x73625140]  ;;  %v44_v43 = vpack.c.bf16 %v28_v37, %v28_v37 }
  0x1b   :  { %587 = vmatpush.bf16.msra.mxu1 %v1069_v26  ;;  %v1123_v41 = vld [vmem:[%s1424_s1 + $0x1f8] sm:$0xff]  ;;  %v47_v44 = vpack.c.bf16 %v31_v38, %v31_v38  ;;  %v45_v45 = vpack.c.bf16 %v29_v39, %v29_v39  ;;  %v1098_v46 = vld [vmem:[%s1424_s1 + $0x130] sm:$0xff]  ;;  %v1097_v50 = vld [vmem:[%s1424_s1 + $0x128] sm:$0xff] }
  0x1c   :  { %600 = vmatpush.bf16.msra.mxu2 %v1077_v27  ;;  %v1106_v47 = vld [vmem:[%s1424_s1 + $0x170] sm:$0xff]  ;;  %v1105_v51 = vld [vmem:[%s1424_s1 + $0x168] sm:$0xff]  ;;  %v1096_v54 = vld [vmem:[%s1424_s1 + $0x120] sm:$0xff] }
  0x1d   :  { %613 = vmatpush.bf16.msra.mxu3 %v1085_v28  ;;  %v1114_v48 = vld [vmem:[%s1424_s1 + $0x1b0] sm:$0xff]  ;;  %v1113_v52 = vld [vmem:[%s1424_s1 + $0x1a8] sm:$0xff]  ;;  %v1104_v55 = vld [vmem:[%s1424_s1 + $0x160] sm:$0xff] }
  0x1e   :  { %575 = vmatpush.bf16.msra.mxu0 %v1060_v30  ;;  %v1122_v49 = vld [vmem:[%s1424_s1 + $0x1f0] sm:$0xff]  ;;  %v1121_v53 = vld [vmem:[%s1424_s1 + $0x1e8] sm:$0xff]  ;;  %v1112_v56 = vld [vmem:[%s1424_s1 + $0x1a0] sm:$0xff] }
  0x1f   :  { %588 = vmatpush.bf16.msra.mxu1 %v1068_v31  ;;  %v1120_v57 = vld [vmem:[%s1424_s1 + $0x1e0] sm:$0xff]  ;;  %v1095_v58 = vld [vmem:[%s1424_s1 + $0x118] sm:$0xff]  ;;  %v1094_v62 = vld [vmem:[%s1424_s1 + $0x110] sm:$0xff] }
  0x20   :  { %601 = vmatpush.bf16.msra.mxu2 %v1076_v32  ;;  %v1103_v59 = vld [vmem:[%s1424_s1 + $0x158] sm:$0xff]  ;;  %v1102_v63 = vld [vmem:[%s1424_s1 + $0x150] sm:$0xff]  ;;  %v1093_v2 = vld [vmem:[%s1424_s1 + $0x108] sm:$0xff] }
  0x21   :  { %614 = vmatpush.bf16.msra.mxu3 %v1084_v33  ;;  %576 = vmatmul.bf16.vlgmr.msra.gmra.mxu0 %v44_v43  ;;  %v1111_v60 = vld [vmem:[%s1424_s1 + $0x198] sm:$0xff]  ;;  %v1110_v0 = vld [vmem:[%s1424_s1 + $0x190] sm:$0xff]  ;;  %v1101_v3 = vld [vmem:[%s1424_s1 + $0x148] sm:$0xff] }
  0x22   :  { %620 = vmatpush.bf16.msrb.mxu0 %v1099_v34  ;;  %589 = vmatmul.bf16.vlgmr.msra.gmra.mxu1 %v45_v45  ;;  %v1119_v61 = vld [vmem:[%s1424_s1 + $0x1d8] sm:$0xff]  ;;  %v1118_v1 = vld [vmem:[%s1424_s1 + $0x1d0] sm:$0xff]  ;;  %v1109_v4 = vld [vmem:[%s1424_s1 + $0x188] sm:$0xff] }
  0x23   :  { %633 = vmatpush.bf16.msrb.mxu1 %v1107_v35  ;;  %602 = vmatmul.bf16.vlgmr.msra.gmra.mxu2 %v46_v42  ;;  %v1117_v5 = vld [vmem:[%s1424_s1 + $0x1c8] sm:$0xff]  ;;  %v1092_v6 = vld [vmem:[%s1424_s1 + $0x100] sm:$0xff]  ;;  %v34_v12 = vld.sshfl [vmem:[#allocation1 + $0x30] sm:$0xff pattern:$0x73625140] }
  0x24   :  { %646 = vmatpush.bf16.msrb.mxu2 %v1115_v40  ;;  %615 = vmatmul.bf16.vlgmr.msra.gmra.mxu3 %v47_v44  ;;  %v1100_v7 = vld [vmem:[%s1424_s1 + $0x140] sm:$0xff]  ;;  %v33_v11 = vld.sshfl [vmem:[#allocation1 + $0x28] sm:$0xff pattern:$0x73625140]  ;;  %v50_v16 = vpack.c.bf16 %v34_v12, %v34_v12  ;;  %v1131_v18 = vld [vmem:[%s1426_s3 + $0x38] sm:$0xff] }
  0x25   :  { %659 = vmatpush.bf16.msrb.mxu3 %v1123_v41  ;;  %v1108_v8 = vld [vmem:[%s1424_s1 + $0x180] sm:$0xff]  ;;  %v35_v13 = vld.sshfl [vmem:[#allocation1 + $0x38] sm:$0xff pattern:$0x73625140]  ;;  %v49_v15 = vpack.c.bf16 %v33_v11, %v33_v11  ;;  %v1130_v19 = vld [vmem:[%s1426_s3 + $0x30] sm:$0xff] }
  0x26   :  { %621 = vmatpush.bf16.msrb.mxu0 %v1098_v46  ;;  %v1116_v9 = vld [vmem:[%s1424_s1 + $0x1c0] sm:$0xff]  ;;  %v51_v17 = vpack.c.bf16 %v35_v13, %v35_v13  ;;  %v1129_v20 = vld [vmem:[%s1426_s3 + $0x28] sm:$0xff]  ;;  %v1127_v22 = vld [vmem:[%s1426_s3 + $0x18] sm:$0xff] }
  0x27   :  { %634 = vmatpush.bf16.msrb.mxu1 %v1106_v47  ;;  %v32_v10 = vld.sshfl [vmem:[#allocation1 + $0x20] sm:$0xff pattern:$0x73625140]  ;;  %v1126_v24 = vld [vmem:[%s1426_s3 + $0x10] sm:$0xff]  ;;  %v1125_v26 = vld [vmem:[%s1426_s3 + $0x8] sm:$0xff] }
  0x28   :  { %647 = vmatpush.bf16.msrb.mxu2 %v1114_v48  ;;  %v48_v14 = vpack.c.bf16 %v32_v10, %v32_v10  ;;  %v1128_v21 = vld [vmem:[%s1426_s3 + $0x20] sm:$0xff] }
  0x29   :  { %660 = vmatpush.bf16.msrb.mxu3 %v1122_v49  ;;  %v1124_v30 = vld [vmem:[%s1426_s3] sm:$0xff] }
  0x2a   :  { %622 = vmatpush.bf16.msrb.mxu0 %v1097_v50  ;;  %v1133_v32 = vld [vmem:[%s1425_s2] ss:$0 sm:$0xff] }
  0x2b   :  { %635 = vmatpush.bf16.msrb.mxu1 %v1105_v51 }
  0x2c   :  { %648 = vmatpush.bf16.msrb.mxu2 %v1113_v52 }
  0x2d   :  { %661 = vmatpush.bf16.msrb.mxu3 %v1121_v53  ;;  %v1134_v53 = vld [vmem:[%s1427_s4] ss:$0 sm:$0xff] }
  0x2e   :  { %623 = vmatpush.bf16.msrb.mxu0 %v1096_v54 }
  0x2f   :  { %636 = vmatpush.bf16.msrb.mxu1 %v1104_v55 }
  0x30   :  { %649 = vmatpush.bf16.msrb.mxu2 %v1112_v56 }
  0x31   :  { %662 = vmatpush.bf16.msrb.mxu3 %v1120_v57 }
  0x32   :  { %624 = vmatpush.bf16.msrb.mxu0 %v1095_v58 }
  0x33   :  { %637 = vmatpush.bf16.msrb.mxu1 %v1103_v59 }
  0x34   :  { %650 = vmatpush.bf16.msrb.mxu2 %v1111_v60 }
  0x35   :  { %663 = vmatpush.bf16.msrb.mxu3 %v1119_v61 }
  0x36   :  { %625 = vmatpush.bf16.msrb.mxu0 %v1094_v62 }
  0x37   :  { %638 = vmatpush.bf16.msrb.mxu1 %v1102_v63 }
  0x38   :  { %651 = vmatpush.bf16.msrb.mxu2 %v1110_v0 }
  0x39   :  { %664 = vmatpush.bf16.msrb.mxu3 %v1118_v1 }
  0x3a   :  { %626 = vmatpush.bf16.msrb.mxu0 %v1093_v2 }
  0x3b   :  { %639 = vmatpush.bf16.msrb.mxu1 %v1101_v3 }
  0x3c   :  { %652 = vmatpush.bf16.msrb.mxu2 %v1109_v4 }
  0x3d   :  { %665 = vmatpush.bf16.msrb.mxu3 %v1117_v5 }
  0x3e   :  { %627 = vmatpush.bf16.msrb.mxu0 %v1092_v6 }
  0x3f   :  { %640 = vmatpush.bf16.msrb.mxu1 %v1100_v7 }
  0x40   :  { %653 = vmatpush.bf16.msrb.mxu2 %v1108_v8 }
  0x41   :  { %666 = vmatpush.bf16.msrb.mxu3 %v1116_v9  ;;  %628 = vmatmul.bf16.vlgmr.msrb.gmra.mxu0 %v48_v14 }
  0x42   :  { %641 = vmatmul.bf16.vlgmr.msrb.gmra.mxu1 %v49_v15  ;;  %742 = vmatpush.bf16.msra.mxu0 %v1131_v18 }
  0x43   :  { %654 = vmatmul.bf16.vlgmr.msrb.gmra.mxu2 %v50_v16 }
  0x44   :  { %667 = vmatmul.bf16.vlgmr.msrb.gmra.mxu3 %v51_v17 }
  0x46   :  { %743 = vmatpush.bf16.msra.mxu0 %v1130_v19 }
  0x4a   :  { %744 = vmatpush.bf16.msra.mxu0 %v1129_v20 }
  0x4e   :  { %745 = vmatpush.bf16.msra.mxu0 %v1128_v21 }
  0x52   :  { %746 = vmatpush.bf16.msra.mxu0 %v1127_v22 }
  0x56   :  { %747 = vmatpush.bf16.msra.mxu0 %v1126_v24 }
  0x5a   :  { %748 = vmatpush.bf16.msra.mxu0 %v1125_v26 }
  0x5e   :  { %749 = vmatpush.bf16.msra.mxu0 %v1124_v30 }
  0x9e   :  { %v577_v23 = vpop.f32.mrf.mxu0 }
  0x9f   :  { %v590_v25 = vpop.f32.mrf.mxu1  ;;  %v578_v35 = vadd.f32 %v1133_v32, %v577_v23 }
  0xa1   :  { %v591_v36 = vadd.f32 %v590_v25, %v578_v35 }
  0xa6   :  { %v603_v27 = vpop.f32.mrf.mxu2  ;;  %v579_v29 = vpop.f32.mrf.mxu0 }
  0xa7   :  { %v616_v28 = vpop.f32.mrf.mxu3  ;;  %v592_v31 = vpop.f32.mrf.mxu1  ;;  %v604_v37 = vadd.f32 %v603_v27, %v591_v36 }
  0xa9   :  { %v617_v38 = vadd.f32 %v616_v28, %v604_v37 }
  0xae   :  { %v605_v33 = vpop.f32.mrf.mxu2 }
  0xaf   :  { %v618_v34 = vpop.f32.mrf.mxu3 }
  0xbe   :  { %v629_v39 = vpop.f32.mrf.mxu0 }
  0xbf   :  { %v642_v40 = vpop.f32.mrf.mxu1  ;;  %v630_v41 = vadd.f32 %v629_v39, %v617_v38 }
  0xc1   :  { %v643_v42 = vadd.f32 %v642_v40, %v630_v41 }
  0xc6   :  { %v655_v43 = vpop.f32.mrf.mxu2  ;;  %v631_v46 = vpop.f32.mrf.mxu0 }
  0xc7   :  { %v668_v44 = vpop.f32.mrf.mxu3  ;;  %v656_v45 = vadd.f32 %v655_v43, %v643_v42  ;;  %v644_v47 = vpop.f32.mrf.mxu1 }
  0xc9   :  { %v669_v48 = vadd.f32 %v668_v44, %v656_v45 }
  0xcb   :  { %v672_v49 = vmax.f32 %v669_v48, 0.0 }
  0xcd   :  { %v673_v50 = vpack.c.bf16 %v672_v49, %v672_v49 }
  0xce   :  { %v657_v51 = vpop.f32.mrf.mxu2 }
  0xcf   :  { %v670_v52 = vpop.f32.mrf.mxu3  ;;  %750 = vmatmul.bf16.vlgmr.msra.gmra.mxu0 %v673_v50 }
 0x14c   :  { %v751_v54 = vpop.f32.mrf.mxu0 }
 0x14d   :  { %v752_v55 = vadd.f32 %v1134_v53, %v751_v54 }
 0x14f   :  { %755 = vst [vmem:[#allocation2] sm:$0x3] %v752_v55 }
 0x150   :  { %766 = dma.vmem_to_hbm [thread:$0]  %s762_s14, 32, %s764_s17, [#allocation3]  }
 0x154   :  { %v753_v56 = vpop.f32.mrf.mxu0 }
 0x155   :  { %1159 = dma.done.wait [#allocation3], 32  }
 0x156   :  { %1160 = vsyncadd [#allocation3], 4294967264 }
 0x157   :  { %771 = vsyncpa [#allocation3], 1 }

</bundles_post_ra>
